<compile_context>
chip_gen: v7x
topology: tpu7x:2x2x1
jax: 0.10.0
libtpu: 0.0.40
codegen_flags: <defaults>
</compile_context>

<pallas_src>
import jax
import jax.numpy as jnp
from jax.experimental import pallas as pl
from jax.experimental.pallas import tpu as pltpu


def _critic_kernel(x_ref, w1_ref, b1_ref, w2_ref, b2_ref, w3t_ref, b3_ref, o_ref):
    # Layer 1: one MXU push over the concatenated [state|action] tile, f32 accumulate.
    h1 = jnp.dot(x_ref[...], w1_ref[...], preferred_element_type=jnp.float32)
    h1 = jnp.maximum(h1 + b1_ref[...], 0.0)                                   # (TB, 512) f32

    # Layer 2.
    h2 = jnp.dot(h1.astype(w2_ref.dtype), w2_ref[...],
                 preferred_element_type=jnp.float32)
    h2 = jnp.maximum(h2 + b2_ref[...], 0.0)                                   # (TB, 256) f32

    # Layer 3, transposed head: w3^T (8,256; rows 1..7 are zero padding) contracted against
    # h2 on the feature axis -> (8, TB) with TB on lanes; row 0 is the real Q row.  The
    # store is a lane-dense (1, TB) segment (no 128-wide zero padding -> ~128x less HBM write).
    q = jax.lax.dot_general(
        w3t_ref[...], h2.astype(w3t_ref.dtype),
        dimension_numbers=(((1,), (1,)), ((), ())),
        preferred_element_type=jnp.float32)                                   # (8, TB) f32
    o_ref[...] = (q[0:1, :] + b3_ref[...]).astype(o_ref.dtype)                # (1, TB)


def _pick_batch_tile(B):
    """Return (TB, padded_B).  Multi-step grids use lane-aligned (multiple-of-128) tiles so
    the (1, TB) output block stays unmasked; tiles up to 2048 amortize the ~0.35 us/step
    grid overhead.  Small batches run as one grid step (block == full array, no padding
    beyond the sublane multiple)."""
    if B < 128:
        bp = ((B + 7) // 8) * 8
        return bp, bp
    best_tb, best_bp = 128, ((B + 127) // 128) * 128
    for tb in (256, 512, 1024, 2048):
        bp = ((B + tb - 1) // tb) * tb
        if bp <= best_bp:      # prefer the biggest tile that doesn't force extra padding
            best_tb, best_bp = tb, bp
    return best_tb, best_bp


def _vmem_limit_bytes(TB, IN, cd_itemsize, param_bytes):
    x_tiles = 2 * TB * IN * cd_itemsize            # double-buffered input tile
    out_tiles = 2 * TB * 4                         # double-buffered (1, TB) f32 output
    inter = TB * (512 + 256) * (4 + cd_itemsize)   # f32 h1/h2 + their compute-dtype copies
    budget = int(1.5 * (x_tiles + out_tiles + 2 * param_bytes + inter))
    # Keep within a cross-generation-safe window (<= ~48 MiB for v7x's 64 MiB physical VMEM).
    return max(16 << 20, min(budget, 48 << 20))


def prepare_critic_params(params, *, compute_dtype=jnp.bfloat16):
    """One-time weight prep (call once, outside the training step, and reuse):
       - cast matmul weights to the MXU compute dtype (bf16 by default; biases stay f32),
       - transpose the (256, 1) head into an (8, 256) block (row 0 real, rows 1..7 zero)
         so the kernel can emit a lane-dense (1, TB) output row."""
    cd = compute_dtype
    w3 = params["w3"]                                                # (256, 1)
    w3t = jnp.zeros((8, w3.shape[0]), cd).at[0, :].set(w3[:, 0].astype(cd))
    return {
        "w1": params["w1"].astype(cd),                               # (S+A, 512)
        "b1": params["b1"].astype(jnp.float32),                      # (1, 512)
        "w2": params["w2"].astype(cd),                               # (512, 256)
        "b2": params["b2"].astype(jnp.float32),                      # (1, 256)
        "w3t": w3t,                                                  # (8, 256)
        "b3": params["b3"].astype(jnp.float32).reshape(1, 1),        # (1, 1)
    }


def critic_forward(state, action, prepped):
    """Pallas forward pass.  `prepped` comes from `prepare_critic_params` (one-time prep).

    state : (B, state_dim) f32,  action: (B, action_dim) f32  ->  (B, 1) f32 Q values.
    """
    B, S = state.shape
    A = action.shape[1]
    IN = S + A
    w1, b1 = prepped["w1"], prepped["b1"]
    w2, b2 = prepped["w2"], prepped["b2"]
    w3t, b3 = prepped["w3t"], prepped["b3"]
    cd = w1.dtype

    # Single layer-1 MXU push: concat [state|action] once in the wrapper; pad the batch
    # only when a multi-step grid actually needs it.
    x = jnp.concatenate([state.astype(cd), action.astype(cd)], axis=1)       # (B, IN)
    TB, Bp = _pick_batch_tile(B)
    if Bp != B:
        x = jnp.concatenate([x, jnp.zeros((Bp - B, IN), cd)], axis=0)

    param_bytes = sum(int(a.size) * a.dtype.itemsize for a in (w1, b1, w2, b2, w3t, b3))
    cost = pl.CostEstimate(
        flops=2 * Bp * (IN * 512 + 512 * 256 + 256 * 1),
        transcendentals=0,
        bytes_accessed=int(x.size) * x.dtype.itemsize + Bp * 4 + param_bytes,
    )

    # Weights/biases pinned to block (0,...,0) -> VMEM-resident across all batch tiles.
    pin = lambda shp: pl.BlockSpec(shp, lambda i, _n=len(shp): (0,) * _n)
    # TODO(synk): pipeline_mode=pl.Buffered(1) on the pinned specs would halve their VMEM
    # footprint; skipped since VMEM is nowhere near binding at these weight sizes.

    out = pl.pallas_call(
        _critic_kernel,
        out_shape=jax.ShapeDtypeStruct((1, Bp), jnp.float32),
        grid=(Bp // TB,),
        in_specs=[
            pl.BlockSpec((TB, IN), lambda i: (i, 0)),        # [state|action] batch tile
            pin(w1.shape), pin(b1.shape),
            pin(w2.shape), pin(b2.shape),
            pin(w3t.shape), pin(b3.shape),
        ],
        out_specs=pl.BlockSpec((1, TB), lambda i: (0, i)),   # lane-dense (1, TB) row segment
        compiler_params=pltpu.CompilerParams(
            dimension_semantics=("parallel",),               # v7x: shard batch across both TCs
            vmem_limit_bytes=_vmem_limit_bytes(TB, IN, w1.dtype.itemsize, param_bytes),
        ),
        cost_estimate=cost,
    )(x, w1, b1, w2, b2, w3t, b3)

    # (1, Bp) lane-dense row -> (B, 1) column of Q values.
    return out[0, :B][:, None]


def init_critic_params(key, state_dim, action_dim):
    """Deterministic synthetic init (stand-in for `init_weights`): scaled normals."""
    in_dim = state_dim + action_dim
    k1, k2, k3 = jax.random.split(key, 3)

    def dense(k, fan_in, fan_out):
        w = jax.random.normal(k, (fan_in, fan_out), jnp.float32) * (1.0 / jnp.sqrt(fan_in))
        b = jnp.zeros((1, fan_out), jnp.float32)
        return w, b

    w1, b1 = dense(k1, in_dim, 512)
    w2, b2 = dense(k2, 512, 256)
    w3, b3 = dense(k3, 256, 1)
    return {"w1": w1, "b1": b1, "w2": w2, "b2": b2, "w3": w3, "b3": b3}


def critic_forward_ref(state, action, params):
    """Pure-JAX reference for correctness check."""
    x = jnp.concatenate([state, action], axis=1)
    h = jnp.maximum(x @ params["w1"] + params["b1"], 0.0)
    h = jnp.maximum(h @ params["w2"] + params["b2"], 0.0)
    return h @ params["w3"] + params["b3"]


if __name__ == "__main__":
    B, STATE_DIM, ACTION_DIM = 8, 24, 8

    key = jax.random.PRNGKey(0)
    kp, ks, ka = jax.random.split(key, 3)

    params = init_critic_params(kp, STATE_DIM, ACTION_DIM)
    state = jax.random.normal(ks, (B, STATE_DIM), jnp.float32)
    action = jax.random.normal(ka, (B, ACTION_DIM), jnp.float32)

    q_ref = critic_forward_ref(state, action, params)

    # f32 path: exact-ish match against the reference.
    prepped_f32 = prepare_critic_params(params, compute_dtype=jnp.float32)
    q_f32 = critic_forward(state, action, prepped_f32)
    jax.block_until_ready(q_f32)
    assert q_f32.shape == (B, 1)
    assert jnp.allclose(q_f32, q_ref, atol=1e-4, rtol=1e-4), "f32 kernel mismatch vs reference"

    # Default bf16-in / f32-accumulate path (peak MXU throughput on v5e/v6e/v7x): loose tol.
    prepped = prepare_critic_params(params)
    q = critic_forward(state, action, prepped)
    jax.block_until_ready(q)
    assert q.shape == (B, 1)
    assert jnp.allclose(q, q_ref, atol=1e-1, rtol=1e-1), "bf16 kernel mismatch vs reference"

    print("KERNEL_OK")
</pallas_src>

<mosaic_0001>
module attributes {stable_mosaic.version = 11 : i64} {
  func.func @_critic_kernel(%arg0: i32, %arg1: memref<8x32xf32, #tpu.memory_space<vmem>>, %arg2: memref<32x512xf32, #tpu.memory_space<vmem>>, %arg3: memref<1x512xf32, #tpu.memory_space<vmem>>, %arg4: memref<512x256xf32, #tpu.memory_space<vmem>>, %arg5: memref<1x256xf32, #tpu.memory_space<vmem>>, %arg6: memref<8x256xf32, #tpu.memory_space<vmem>>, %arg7: memref<1x1xf32, #tpu.memory_space<vmem>>, %arg8: memref<1x8xf32, #tpu.memory_space<vmem>>) attributes {dimension_semantics = [#tpu.dimension_semantics<parallel>], iteration_bounds = array<i64: 1>, scalar_prefetch = 0 : i64, scratch_operands = 0 : i64, tpu.core_type = #tpu.core_type<tc>, window_params = [{transform_indices = @transform_0, window_bounds = array<i64: 8, 32>}, {pipeline_mode = #tpu.pipeline_mode<synchronous>, transform_indices = @transform_1, window_bounds = array<i64: 32, 512>}, {pipeline_mode = #tpu.pipeline_mode<synchronous>, transform_indices = @transform_2, window_bounds = array<i64: 1, 512>}, {pipeline_mode = #tpu.pipeline_mode<synchronous>, transform_indices = @transform_3, window_bounds = array<i64: 512, 256>}, {pipeline_mode = #tpu.pipeline_mode<synchronous>, transform_indices = @transform_4, window_bounds = array<i64: 1, 256>}, {pipeline_mode = #tpu.pipeline_mode<synchronous>, transform_indices = @transform_5, window_bounds = array<i64: 8, 256>}, {pipeline_mode = #tpu.pipeline_mode<synchronous>, transform_indices = @transform_6, window_bounds = array<i64: 1, 1>}, {transform_indices = @transform_7, window_bounds = array<i64: 1, 8>}]} {
    %c0 = arith.constant 0 : index
    %c0_0 = arith.constant 0 : index
    %0 = vector.load %arg1[%c0, %c0_0] : memref<8x32xf32, #tpu.memory_space<vmem>>, vector<8x32xf32>
    %c0_1 = arith.constant 0 : index
    %c0_2 = arith.constant 0 : index
    %1 = vector.load %arg2[%c0_1, %c0_2] : memref<32x512xf32, #tpu.memory_space<vmem>>, vector<32x512xf32>
    %cst = arith.constant dense<0.000000e+00> : vector<8x512xf32>
    %2 = tpu.matmul %0, %1, %cst {dimension_numbers = #tpu.dot_dimension_numbers<[1], [0], [0], [1], [0, 0, 1, 1], [], []>} : vector<8x32xf32>, vector<32x512xf32>, vector<8x512xf32> -> vector<8x512xf32>
    %c0_3 = arith.constant 0 : index
    %c0_4 = arith.constant 0 : index
    %3 = vector.load %arg3[%c0_3, %c0_4] : memref<1x512xf32, #tpu.memory_space<vmem>>, vector<1x512xf32>
    %4 = vector.broadcast %3 : vector<1x512xf32> to vector<8x512xf32>
    %5 = arith.addf %2, %4 : vector<8x512xf32>
    %cst_5 = arith.constant 0.000000e+00 : f32
    %6 = vector.broadcast %cst_5 : f32 to vector<8x512xf32>
    %7 = arith.maximumf %5, %6 : vector<8x512xf32>
    %c0_6 = arith.constant 0 : index
    %c0_7 = arith.constant 0 : index
    %8 = vector.load %arg4[%c0_6, %c0_7] : memref<512x256xf32, #tpu.memory_space<vmem>>, vector<512x256xf32>
    %cst_8 = arith.constant dense<0.000000e+00> : vector<8x256xf32>
    %9 = tpu.matmul %7, %8, %cst_8 {dimension_numbers = #tpu.dot_dimension_numbers<[1], [0], [0], [1], [0, 0, 1, 1], [], []>} : vector<8x512xf32>, vector<512x256xf32>, vector<8x256xf32> -> vector<8x256xf32>
    %c0_9 = arith.constant 0 : index
    %c0_10 = arith.constant 0 : index
    %10 = vector.load %arg5[%c0_9, %c0_10] : memref<1x256xf32, #tpu.memory_space<vmem>>, vector<1x256xf32>
    %11 = vector.broadcast %10 : vector<1x256xf32> to vector<8x256xf32>
    %12 = arith.addf %9, %11 : vector<8x256xf32>
    %cst_11 = arith.constant 0.000000e+00 : f32
    %13 = vector.broadcast %cst_11 : f32 to vector<8x256xf32>
    %14 = arith.maximumf %12, %13 : vector<8x256xf32>
    %c0_12 = arith.constant 0 : index
    %c0_13 = arith.constant 0 : index
    %15 = vector.load %arg6[%c0_12, %c0_13] : memref<8x256xf32, #tpu.memory_space<vmem>>, vector<8x256xf32>
    %cst_14 = arith.constant dense<0.000000e+00> : vector<8x8xf32>
    %16 = tpu.matmul %15, %14, %cst_14 {dimension_numbers = #tpu.dot_dimension_numbers<[1], [1], [0], [0], [0, 0, 1, 0], [], []>} : vector<8x256xf32>, vector<8x256xf32>, vector<8x8xf32> -> vector<8x8xf32>
    %17 = vector.extract_strided_slice %16 {offsets = [0, 0], sizes = [1, 8], strides = [1, 1]} : vector<8x8xf32> to vector<1x8xf32>
    %c0_15 = arith.constant 0 : index
    %c0_16 = arith.constant 0 : index
    %18 = vector.load %arg7[%c0_15, %c0_16] : memref<1x1xf32, #tpu.memory_space<vmem>>, vector<1x1xf32>
    %19 = vector.broadcast %18 : vector<1x1xf32> to vector<1x8xf32>
    %20 = arith.addf %17, %19 : vector<1x8xf32>
    %c0_17 = arith.constant 0 : index
    %c0_18 = arith.constant 0 : index
    %21 = vector.load %arg8[%c0_17, %c0_18] : memref<1x8xf32, #tpu.memory_space<vmem>>, vector<1x8xf32>
    tpu.vector_store %arg8[%c0_17, %c0_18], %20 {strides = array<i32>} : memref<1x8xf32, #tpu.memory_space<vmem>>, vector<1x8xf32>,
    return
  }
  func.func @transform_0(%arg0: i32) -> (i32, i32) {
    %c0_i32 = arith.constant 0 : i32
    %c0_i32_0 = arith.constant 0 : i32
    return %arg0, %c0_i32 : i32, i32
  }
  func.func @transform_1(%arg0: i32) -> (i32, i32) {
    %c0_i32 = arith.constant 0 : i32
    %c0_i32_0 = arith.constant 0 : i32
    %c0_i32_1 = arith.constant 0 : i32
    return %c0_i32, %c0_i32_0 : i32, i32
  }
  func.func @transform_2(%arg0: i32) -> (i32, i32) {
    %c0_i32 = arith.constant 0 : i32
    %c0_i32_0 = arith.constant 0 : i32
    %c0_i32_1 = arith.constant 0 : i32
    return %c0_i32, %c0_i32_0 : i32, i32
  }
  func.func @transform_3(%arg0: i32) -> (i32, i32) {
    %c0_i32 = arith.constant 0 : i32
    %c0_i32_0 = arith.constant 0 : i32
    %c0_i32_1 = arith.constant 0 : i32
    return %c0_i32, %c0_i32_0 : i32, i32
  }
  func.func @transform_4(%arg0: i32) -> (i32, i32) {
    %c0_i32 = arith.constant 0 : i32
    %c0_i32_0 = arith.constant 0 : i32
    %c0_i32_1 = arith.constant 0 : i32
    return %c0_i32, %c0_i32_0 : i32, i32
  }
  func.func @transform_5(%arg0: i32) -> (i32, i32) {
    %c0_i32 = arith.constant 0 : i32
    %c0_i32_0 = arith.constant 0 : i32
    %c0_i32_1 = arith.constant 0 : i32
    return %c0_i32, %c0_i32_0 : i32, i32
  }
  func.func @transform_6(%arg0: i32) -> (i32, i32) {
    %c0_i32 = arith.constant 0 : i32
    %c0_i32_0 = arith.constant 0 : i32
    %c0_i32_1 = arith.constant 0 : i32
    return %c0_i32, %c0_i32_0 : i32, i32
  }
  func.func @transform_7(%arg0: i32) -> (i32, i32) {
    %c0_i32 = arith.constant 0 : i32
    %c0_i32_0 = arith.constant 0 : i32
    return %c0_i32, %arg0 : i32, i32
  }
}

</mosaic_0001>

<bundles_post_ra>
// kernel: tpu_custom_call.1
= control target key start
LH: loop header
LB: loop body
LE: loop exit
PB: predicated region body
PF: predicated region fallthrough
CT: control target
= control target key end

     0   :  { %s1012_s0 = inlined_call_operand.hbm [shape: f32[8,32], index: 0, kind: input, shape index: {}]   ;;  %s1013_s1 = inlined_call_operand.hbm [shape: f32[32,512], index: 1, kind: input, shape index: {}]   ;;  %s1014_s2 = inlined_call_operand.vmem [shape: f32[1,512], index: 2, kind: input, shape index: {}]   ;;  %s1015_s3 = inlined_call_operand.hbm [shape: f32[512,256], index: 3, kind: input, shape index: {}]   ;;  %s1016_s4 = inlined_call_operand.vmem [shape: f32[1,256], index: 4, kind: input, shape index: {}]   ;;  %s1017_s5 = inlined_call_operand.vmem [shape: f32[8,256], index: 5, kind: input, shape index: {}]   ;;  %s1018_s6 = inlined_call_operand.<no memory space> [shape: f32[1,1], index: 6, kind: input, shape index: {}]   ;;  %s1019_s7 = inlined_call_operand.hbm [shape: f32[1,8], index: 7, kind: output, shape index: {}]  }
   0x1   :  { %v12_v0 = vstv %s1018_s6 }
   0x2   :  { %13 = vst [vmem:[#allocation2] sm:$0x1] %v12_v0 }
   0x3   :  { %14 = vsyncpa [#allocation4], 0 }
   0x4   :  { %15 = vsyncpa [#allocation7], 0 }
   0x5   :  { %16 = vsyncpa [#allocation5], 0  ;;  %s897_s26 = smov [#allocation6]   ;;  %s803_s30 = scalar_lea.hbm %s1013_s1, 2048 }
   0x6   :  { %s32_s27 = sshll.u32 %s897_s26, 4  ;;  %p804_p0 = scmp.ne.s32.totalorder %s1013_s1, %s803_s30  ;;  %s33_s27 = int_to_ptr.vmem [resolvable:$true] %s32_s27 }
   0x7   :  { %p807_p1 = scmp.lt.u32.totalorder %s803_s30, %s1013_s1 }
   0x9   :  { %p809_p2 = pnand %p807_p1, %p804_p0 }
   0xb   :  { %812 = shalt.err (!%p809_p2)
}
   0xc   :  { %s813_s6 = scalar_lea.vmem %s33_s27, 2048  ;;  %p818_p4 = scmp.lt.s32.totalorder %s33_s27, %s33_s27 }
   0xd   :  { %p814_p3 = scmp.ne.s32.totalorder %s33_s27, %s813_s6  ;;  %p819_p5 = scmp.lt.s32.totalorder %s813_s6, %s813_s6 }
   0xf   :  { %p820_p6 = por %p819_p5, %p818_p4 }
  0x11   :  { %p821_p7 = pnand %p820_p6, %p814_p3 }
  0x13   :  { %824 = shalt.err (!%p821_p7)
}
  0x14   :  { %s898_s12 = smov 512   ;;  %s899_s13 = smov 32  }
  0x15   :  { %38 = dma.hbm_to_vmem [thread:$0]  %s1013_s1, 2048, %s33_s27, [#allocation7], %s898_s12, %s898_s12, %s899_s13  }
  0x16   :  { %s900_s16 = smov [#allocation3]   ;;  %s901_s18 = smov [#allocation8]  }
  0x17   :  { %s23_s17 = sshll.u32 %s900_s16, 4  ;;  %s46_s19 = sshll.u32 %s901_s18, 4  ;;  %s24_s17 = int_to_ptr.vmem [resolvable:$true] %s23_s17  ;;  %s47_s19 = int_to_ptr.vmem [resolvable:$true] %s46_s19 }
  0x18   :  { %s825_s22 = scalar_lea.hbm %s1012_s0, 128 }
  0x19   :  { %p826_p8 = scmp.ne.s32.totalorder %s1012_s0, %s825_s22  ;;  %p829_p9 = scmp.lt.u32.totalorder %s825_s22, %s1012_s0 }
  0x1b   :  { %p831_p10 = pnand %p829_p9, %p826_p8 }
  0x1d   :  { %834 = shalt.err (!%p831_p10)
}
  0x1e   :  { %s835_s1 = scalar_lea.vmem %s24_s17, 128  ;;  %p840_p12 = scmp.lt.s32.totalorder %s24_s17, %s24_s17 }
  0x1f   :  { %p836_p11 = scmp.ne.s32.totalorder %s24_s17, %s835_s1  ;;  %p841_p13 = scmp.lt.s32.totalorder %s835_s1, %s835_s1 }
  0x21   :  { %p842_p0 = por %p841_p13, %p840_p12 }
  0x23   :  { %p843_p1 = pnand %p842_p0, %p836_p11 }
  0x25   :  { %846 = shalt.err (!%p843_p1)
}
  0x26   :  { %26 = dma.hbm_to_vmem [thread:$0]  %s1012_s0, 128, %s24_s17, [#allocation4]  }
  0x27   :  { %s847_s8 = scalar_lea.hbm %s1015_s3, 16384 }
  0x28   :  { %p848_p2 = scmp.ne.s32.totalorder %s1015_s3, %s847_s8  ;;  %p851_p3 = scmp.lt.u32.totalorder %s847_s8, %s1015_s3 }
  0x2a   :  { %p853_p4 = pnand %p851_p3, %p848_p2 }
  0x2c   :  { %856 = shalt.err (!%p853_p4)
}
  0x2d   :  { %s857_s12 = scalar_lea.vmem %s47_s19, 16384  ;;  %p862_p6 = scmp.lt.s32.totalorder %s47_s19, %s47_s19 }
  0x2e   :  { %p858_p5 = scmp.ne.s32.totalorder %s47_s19, %s857_s12  ;;  %p863_p7 = scmp.lt.s32.totalorder %s857_s12, %s857_s12 }
  0x30   :  { %p864_p8 = por %p863_p7, %p862_p6 }
  0x32   :  { %p865_p9 = pnand %p864_p8, %p858_p5 }
  0x34   :  { %868 = shalt.err (!%p865_p9)
}
  0x35   :  { %s902_s0 = smov 256   ;;  %s903_s13 = smov 16  }
  0x36   :  { %52 = dma.hbm_to_vmem [thread:$0]  %s1015_s3, 16384, %s47_s19, [#allocation7], %s902_s0, %s902_s0, %s903_s13  }
  0x37   :  { %891 = dma.done.wait [#allocation4], 128  }
  0x38   :  { %892 = vsyncadd [#allocation4], 4294967168 }
  0x39   :  { %893 = dma.done.wait [#allocation7], 18432  }
  0x3a   :  { %894 = vsyncadd [#allocation7], 4294948864  ;;  %v904_v1 = vmov 0.0   ;;  %v70_v2 = vld [vmem:[#allocation6 + $0x8] sm:$0xff]  ;;  %v72_v4 = vld [vmem:[#allocation6 + $0x18] sm:$0xff]  ;;  %vm107_vm0 = vcmask 261120  }
  0x3b   :  { %175 = vmatprep.mubr.f32.mxu0 %v904_v1  ;;  %246 = vmatprep.mubr.f32.mxu1 %v904_v1  ;;  %v74_v3 = vld [vmem:[#allocation6 + $0x28] sm:$0xff]  ;;  %v76_v6 = vld [vmem:[#allocation6 + $0x38] sm:$0xff]  ;;  %v69_v7 = vld [vmem:[#allocation6] sm:$0xff]  ;;  %vm624_vm1 = vcmask 57344  }
  0x3c   :  { %v644_v5 = vpack.c.bf16 %v74_v3, %v70_v2  ;;  %v73_v8 = vld [vmem:[#allocation6 + $0x20] sm:$0xff]  ;;  %v652_v9 = vpack.c.bf16 %v76_v6, %v72_v4  ;;  %v71_v11 = vld [vmem:[#allocation6 + $0x10] sm:$0xff]  ;;  %v78_v13 = vld [vmem:[#allocation6 + $0x48] sm:$0xff] }
  0x3d   :  { %v646_v10 = vpack.c.bf16 %v73_v8, %v69_v7  ;;  %v75_v12 = vld [vmem:[#allocation6 + $0x30] sm:$0xff]  ;;  %v82_v15 = vld [vmem:[#allocation6 + $0x68] sm:$0xff]  ;;  %v80_v16 = vld [vmem:[#allocation6 + $0x58] sm:$0xff] }
  0x3e   :  { %645 = vmatprep.subr.bf16.mxu0 %v644_v5  ;;  %v654_v14 = vpack.c.bf16 %v75_v12, %v71_v11  ;;  %v84_v17 = vld [vmem:[#allocation6 + $0x78] sm:$0xff]  ;;  %653 = vmatprep.subr.bf16.mxu1 %v652_v9  ;;  %v648_v18 = vpack.c.bf16 %v82_v15, %v78_v13  ;;  %v77_v20 = vld [vmem:[#allocation6 + $0x40] sm:$0xff]  ;;  %v79_v22 = vld [vmem:[#allocation6 + $0x50] sm:$0xff] }
  0x3f   :  { %647 = vmatpush1.bf16.msra.mxu0 %v646_v10  ;;  %v656_v19 = vpack.c.bf16 %v84_v17, %v80_v16  ;;  %v81_v21 = vld [vmem:[#allocation6 + $0x60] sm:$0xff]  ;;  %v83_v24 = vld [vmem:[#allocation6 + $0x70] sm:$0xff]  ;;  %v258_v25 = vld [vmem:[#allocation8 + $0x8] sm:$0xff] }
  0x40   :  { %655 = vmatpush1.bf16.msra.mxu1 %v654_v14  ;;  %v650_v23 = vpack.c.bf16 %v81_v21, %v77_v20  ;;  %649 = vmatprep.subr.bf16.mxu0 %v648_v18  ;;  %v658_v26 = vpack.c.bf16 %v83_v24, %v79_v22  ;;  %v68_v27 = vld [vmem:[#allocation3] sm:$0xff]  ;;  %v322_v29 = vld [vmem:[#allocation8 + $0x208] sm:$0xff]  ;;  %v257_v33 = vld [vmem:[#allocation8] sm:$0xff] }
  0x41   :  { %657 = vmatprep.subr.bf16.mxu1 %v656_v19  ;;  %v260_v28 = vld [vmem:[#allocation8 + $0x18] sm:$0xff]  ;;  %v259_v34 = vld [vmem:[#allocation8 + $0x10] sm:$0xff]  ;;  %v321_v35 = vld [vmem:[#allocation8 + $0x200] sm:$0xff] }
  0x42   :  { %v324_v30 = vld [vmem:[#allocation8 + $0x218] sm:$0xff]  ;;  %v660_v31 = vpack.c.bf16 %v260_v28, %v258_v25  ;;  %v323_v36 = vld [vmem:[#allocation8 + $0x210] sm:$0xff]  ;;  %v262_v37 = vld [vmem:[#allocation8 + $0x28] sm:$0xff]  ;;  %v662_v39 = vpack.c.bf16 %v259_v34, %v257_v33 }
  0x43   :  { %v724_v32 = vpack.c.bf16 %v324_v30, %v322_v29  ;;  %651 = vmatpush1.bf16.msra.mxu0 %v650_v23  ;;  %v264_v38 = vld [vmem:[#allocation8 + $0x38] sm:$0xff]  ;;  %v726_v40 = vpack.c.bf16 %v323_v36, %v321_v35  ;;  %v326_v41 = vld [vmem:[#allocation8 + $0x228] sm:$0xff]  ;;  %v261_v43 = vld [vmem:[#allocation8 + $0x20] sm:$0xff] }
  0x44   :  { %659 = vmatpush1.bf16.msra.mxu1 %v658_v26  ;;  %v328_v42 = vld [vmem:[#allocation8 + $0x238] sm:$0xff]  ;;  %v664_v44 = vpack.c.bf16 %v264_v38, %v262_v37  ;;  %v263_v46 = vld [vmem:[#allocation8 + $0x30] sm:$0xff]  ;;  %v325_v47 = vld [vmem:[#allocation8 + $0x220] sm:$0xff] }
  0x45   :  { %725 = vmatprep.subr.bf16.mxu0 %v724_v32  ;;  %661 = vmatprep.subr.bf16.mxu1 %v660_v31  ;;  %v728_v45 = vpack.c.bf16 %v328_v42, %v326_v41  ;;  %v327_v48 = vld [vmem:[#allocation8 + $0x230] sm:$0xff]  ;;  %v266_v49 = vld [vmem:[#allocation8 + $0x48] sm:$0xff]  ;;  %v268_v50 = vld [vmem:[#allocation8 + $0x58] sm:$0xff]  ;;  %v666_v54 = vpack.c.bf16 %v263_v46, %v261_v43 }
  0x46   :  { %642 = vmatmul.mubr.msk.f32.vlgmr.msra.gmra.mrb[0].mxu0 %vm107_vm0, %v68_v27  ;;  %v330_v51 = vld [vmem:[#allocation8 + $0x248] sm:$0xff]  ;;  %v730_v52 = vpack.c.bf16 %v327_v48, %v325_v47  ;;  %v332_v53 = vld [vmem:[#allocation8 + $0x258] sm:$0xff]  ;;  %v265_v56 = vld [vmem:[#allocation8 + $0x40] sm:$0xff]  ;;  %v668_v59 = vpack.c.bf16 %v268_v50, %v266_v49 }
  0x47   :  { %643 = vmatmul.mubr.msk.f32.vlgmr.msra.gmra.mrb[0].mxu1 %vm107_vm0, %v68_v27  ;;  %727 = vmatpush1.bf16.msra.mxu0 %v726_v40  ;;  %v732_v55 = vpack.c.bf16 %v332_v53, %v330_v51  ;;  %v329_v57 = vld [vmem:[#allocation8 + $0x240] sm:$0xff]  ;;  %v331_v58 = vld [vmem:[#allocation8 + $0x250] sm:$0xff]  ;;  %v334_v61 = vld [vmem:[#allocation8 + $0x268] sm:$0xff] }
  0x48   :  { %663 = vmatpush1.bf16.msra.mxu1 %v662_v39  ;;  %729 = vmatprep.subr.bf16.mxu0 %v728_v45  ;;  %v267_v60 = vld [vmem:[#allocation8 + $0x50] sm:$0xff]  ;;  %v336_v62 = vld [vmem:[#allocation8 + $0x278] sm:$0xff]  ;;  %v270_v63 = vld [vmem:[#allocation8 + $0x68] sm:$0xff]  ;;  %v734_v1 = vpack.c.bf16 %v331_v58, %v329_v57 }
  0x49   :  { %665 = vmatprep.subr.bf16.mxu1 %v664_v44  ;;  %v272_v0 = vld [vmem:[#allocation8 + $0x78] sm:$0xff]  ;;  %v670_v2 = vpack.c.bf16 %v267_v60, %v265_v56  ;;  %v736_v3 = vpack.c.bf16 %v336_v62, %v334_v61  ;;  %v269_v4 = vld [vmem:[#allocation8 + $0x60] sm:$0xff]  ;;  %v335_v6 = vld [vmem:[#allocation8 + $0x270] sm:$0xff] }
  0x4a   :  { %v333_v5 = vld [vmem:[#allocation8 + $0x260] sm:$0xff]  ;;  %v672_v7 = vpack.c.bf16 %v272_v0, %v270_v63  ;;  %v271_v8 = vld [vmem:[#allocation8 + $0x70] sm:$0xff]  ;;  %v338_v9 = vld [vmem:[#allocation8 + $0x288] sm:$0xff] }
  0x4b   :  { %731 = vmatpush1.bf16.msra.mxu0 %v730_v52  ;;  %v340_v10 = vld [vmem:[#allocation8 + $0x298] sm:$0xff]  ;;  %v274_v11 = vld [vmem:[#allocation8 + $0x88] sm:$0xff]  ;;  %v738_v13 = vpack.c.bf16 %v335_v6, %v333_v5  ;;  %v674_v14 = vpack.c.bf16 %v271_v8, %v269_v4  ;;  %v273_v16 = vld [vmem:[#allocation8 + $0x80] sm:$0xff] }
  0x4c   :  { %667 = vmatpush1.bf16.msra.mxu1 %v666_v54  ;;  %733 = vmatprep.subr.bf16.mxu0 %v732_v55  ;;  %v276_v12 = vld [vmem:[#allocation8 + $0x98] sm:$0xff]  ;;  %v740_v15 = vpack.c.bf16 %v340_v10, %v338_v9  ;;  %v337_v17 = vld [vmem:[#allocation8 + $0x280] sm:$0xff]  ;;  %v339_v18 = vld [vmem:[#allocation8 + $0x290] sm:$0xff] }
  0x4d   :  { %669 = vmatprep.subr.bf16.mxu1 %v668_v59  ;;  %v676_v19 = vpack.c.bf16 %v276_v12, %v274_v11  ;;  %v275_v20 = vld [vmem:[#allocation8 + $0x90] sm:$0xff]  ;;  %v342_v21 = vld [vmem:[#allocation8 + $0x2a8] sm:$0xff]  ;;  %v344_v22 = vld [vmem:[#allocation8 + $0x2b8] sm:$0xff]  ;;  %v742_v25 = vpack.c.bf16 %v339_v18, %v337_v17 }
  0x4e   :  { %v278_v23 = vld [vmem:[#allocation8 + $0xa8] sm:$0xff]  ;;  %v280_v24 = vld [vmem:[#allocation8 + $0xb8] sm:$0xff]  ;;  %v678_v26 = vpack.c.bf16 %v275_v20, %v273_v16  ;;  %v744_v27 = vpack.c.bf16 %v344_v22, %v342_v21  ;;  %v277_v28 = vld [vmem:[#allocation8 + $0xa0] sm:$0xff] }
  0x4f   :  { %735 = vmatpush1.bf16.msra.mxu0 %v734_v1  ;;  %v341_v29 = vld [vmem:[#allocation8 + $0x2a0] sm:$0xff]  ;;  %v343_v30 = vld [vmem:[#allocation8 + $0x2b0] sm:$0xff]  ;;  %v680_v31 = vpack.c.bf16 %v280_v24, %v278_v23  ;;  %v346_v33 = vld [vmem:[#allocation8 + $0x2c8] sm:$0xff] }
  0x50   :  { %671 = vmatpush1.bf16.msra.mxu1 %v670_v2  ;;  %737 = vmatprep.subr.bf16.mxu0 %v736_v3  ;;  %v279_v32 = vld [vmem:[#allocation8 + $0xb0] sm:$0xff]  ;;  %v348_v34 = vld [vmem:[#allocation8 + $0x2d8] sm:$0xff]  ;;  %v282_v35 = vld [vmem:[#allocation8 + $0xc8] sm:$0xff]  ;;  %v746_v37 = vpack.c.bf16 %v343_v30, %v341_v29 }
  0x51   :  { %673 = vmatprep.subr.bf16.mxu1 %v672_v7  ;;  %v284_v36 = vld [vmem:[#allocation8 + $0xd8] sm:$0xff]  ;;  %v682_v38 = vpack.c.bf16 %v279_v32, %v277_v28  ;;  %v748_v39 = vpack.c.bf16 %v348_v34, %v346_v33  ;;  %v281_v40 = vld [vmem:[#allocation8 + $0xc0] sm:$0xff]  ;;  %v347_v42 = vld [vmem:[#allocation8 + $0x2d0] sm:$0xff] }
  0x52   :  { %v345_v41 = vld [vmem:[#allocation8 + $0x2c0] sm:$0xff]  ;;  %v684_v43 = vpack.c.bf16 %v284_v36, %v282_v35  ;;  %v283_v44 = vld [vmem:[#allocation8 + $0xd0] sm:$0xff]  ;;  %v350_v45 = vld [vmem:[#allocation8 + $0x2e8] sm:$0xff] }
  0x53   :  { %739 = vmatpush1.bf16.msra.mxu0 %v738_v13  ;;  %v352_v46 = vld [vmem:[#allocation8 + $0x2f8] sm:$0xff]  ;;  %v286_v47 = vld [vmem:[#allocation8 + $0xe8] sm:$0xff]  ;;  %v750_v49 = vpack.c.bf16 %v347_v42, %v345_v41  ;;  %v686_v50 = vpack.c.bf16 %v283_v44, %v281_v40  ;;  %v285_v52 = vld [vmem:[#allocation8 + $0xe0] sm:$0xff] }
  0x54   :  { %675 = vmatpush1.bf16.msra.mxu1 %v674_v14  ;;  %741 = vmatprep.subr.bf16.mxu0 %v740_v15  ;;  %v288_v48 = vld [vmem:[#allocation8 + $0xf8] sm:$0xff]  ;;  %v752_v51 = vpack.c.bf16 %v352_v46, %v350_v45  ;;  %v349_v53 = vld [vmem:[#allocation8 + $0x2e0] sm:$0xff]  ;;  %v351_v54 = vld [vmem:[#allocation8 + $0x2f0] sm:$0xff] }
  0x55   :  { %677 = vmatprep.subr.bf16.mxu1 %v676_v19  ;;  %v688_v55 = vpack.c.bf16 %v288_v48, %v286_v47  ;;  %v287_v56 = vld [vmem:[#allocation8 + $0xf0] sm:$0xff]  ;;  %v354_v57 = vld [vmem:[#allocation8 + $0x308] sm:$0xff]  ;;  %v356_v58 = vld [vmem:[#allocation8 + $0x318] sm:$0xff]  ;;  %v754_v61 = vpack.c.bf16 %v351_v54, %v349_v53 }
  0x56   :  { %v290_v59 = vld [vmem:[#allocation8 + $0x108] sm:$0xff]  ;;  %v292_v60 = vld [vmem:[#allocation8 + $0x118] sm:$0xff]  ;;  %v690_v62 = vpack.c.bf16 %v287_v56, %v285_v52  ;;  %v756_v63 = vpack.c.bf16 %v356_v58, %v354_v57  ;;  %v289_v0 = vld [vmem:[#allocation8 + $0x100] sm:$0xff] }
  0x57   :  { %743 = vmatpush1.bf16.msra.mxu0 %v742_v25  ;;  %v353_v1 = vld [vmem:[#allocation8 + $0x300] sm:$0xff]  ;;  %v355_v2 = vld [vmem:[#allocation8 + $0x310] sm:$0xff]  ;;  %v692_v3 = vpack.c.bf16 %v292_v60, %v290_v59  ;;  %v358_v5 = vld [vmem:[#allocation8 + $0x328] sm:$0xff] }
  0x58   :  { %679 = vmatpush1.bf16.msra.mxu1 %v678_v26  ;;  %745 = vmatprep.subr.bf16.mxu0 %v744_v27  ;;  %v291_v4 = vld [vmem:[#allocation8 + $0x110] sm:$0xff]  ;;  %v360_v6 = vld [vmem:[#allocation8 + $0x338] sm:$0xff]  ;;  %v294_v7 = vld [vmem:[#allocation8 + $0x128] sm:$0xff]  ;;  %v758_v9 = vpack.c.bf16 %v355_v2, %v353_v1 }
  0x59   :  { %681 = vmatprep.subr.bf16.mxu1 %v680_v31  ;;  %v296_v8 = vld [vmem:[#allocation8 + $0x138] sm:$0xff]  ;;  %v694_v10 = vpack.c.bf16 %v291_v4, %v289_v0  ;;  %v760_v11 = vpack.c.bf16 %v360_v6, %v358_v5  ;;  %v293_v12 = vld [vmem:[#allocation8 + $0x120] sm:$0xff]  ;;  %v359_v14 = vld [vmem:[#allocation8 + $0x330] sm:$0xff] }
  0x5a   :  { %v357_v13 = vld [vmem:[#allocation8 + $0x320] sm:$0xff]  ;;  %v696_v15 = vpack.c.bf16 %v296_v8, %v294_v7  ;;  %v295_v16 = vld [vmem:[#allocation8 + $0x130] sm:$0xff]  ;;  %v362_v17 = vld [vmem:[#allocation8 + $0x348] sm:$0xff] }
  0x5b   :  { %747 = vmatpush1.bf16.msra.mxu0 %v746_v37  ;;  %v364_v18 = vld [vmem:[#allocation8 + $0x358] sm:$0xff]  ;;  %v298_v19 = vld [vmem:[#allocation8 + $0x148] sm:$0xff]  ;;  %v762_v21 = vpack.c.bf16 %v359_v14, %v357_v13  ;;  %v698_v22 = vpack.c.bf16 %v295_v16, %v293_v12  ;;  %v297_v24 = vld [vmem:[#allocation8 + $0x140] sm:$0xff] }
  0x5c   :  { %683 = vmatpush1.bf16.msra.mxu1 %v682_v38  ;;  %749 = vmatprep.subr.bf16.mxu0 %v748_v39  ;;  %v300_v20 = vld [vmem:[#allocation8 + $0x158] sm:$0xff]  ;;  %v764_v23 = vpack.c.bf16 %v364_v18, %v362_v17  ;;  %v361_v25 = vld [vmem:[#allocation8 + $0x340] sm:$0xff]  ;;  %v363_v26 = vld [vmem:[#allocation8 + $0x350] sm:$0xff] }
  0x5d   :  { %685 = vmatprep.subr.bf16.mxu1 %v684_v43  ;;  %v700_v27 = vpack.c.bf16 %v300_v20, %v298_v19  ;;  %v299_v28 = vld [vmem:[#allocation8 + $0x150] sm:$0xff]  ;;  %v366_v29 = vld [vmem:[#allocation8 + $0x368] sm:$0xff]  ;;  %v368_v30 = vld [vmem:[#allocation8 + $0x378] sm:$0xff]  ;;  %v766_v33 = vpack.c.bf16 %v363_v26, %v361_v25 }
  0x5e   :  { %v302_v31 = vld [vmem:[#allocation8 + $0x168] sm:$0xff]  ;;  %v304_v32 = vld [vmem:[#allocation8 + $0x178] sm:$0xff]  ;;  %v702_v34 = vpack.c.bf16 %v299_v28, %v297_v24  ;;  %v768_v35 = vpack.c.bf16 %v368_v30, %v366_v29  ;;  %v301_v36 = vld [vmem:[#allocation8 + $0x160] sm:$0xff] }
  0x5f   :  { %751 = vmatpush1.bf16.msra.mxu0 %v750_v49  ;;  %v365_v37 = vld [vmem:[#allocation8 + $0x360] sm:$0xff]  ;;  %v367_v38 = vld [vmem:[#allocation8 + $0x370] sm:$0xff]  ;;  %v704_v39 = vpack.c.bf16 %v304_v32, %v302_v31  ;;  %v370_v41 = vld [vmem:[#allocation8 + $0x388] sm:$0xff] }
  0x60   :  { %687 = vmatpush1.bf16.msra.mxu1 %v686_v50  ;;  %753 = vmatprep.subr.bf16.mxu0 %v752_v51  ;;  %v303_v40 = vld [vmem:[#allocation8 + $0x170] sm:$0xff]  ;;  %v372_v42 = vld [vmem:[#allocation8 + $0x398] sm:$0xff]  ;;  %v306_v43 = vld [vmem:[#allocation8 + $0x188] sm:$0xff]  ;;  %v770_v45 = vpack.c.bf16 %v367_v38, %v365_v37 }
  0x61   :  { %689 = vmatprep.subr.bf16.mxu1 %v688_v55  ;;  %v308_v44 = vld [vmem:[#allocation8 + $0x198] sm:$0xff]  ;;  %v706_v46 = vpack.c.bf16 %v303_v40, %v301_v36  ;;  %v772_v47 = vpack.c.bf16 %v372_v42, %v370_v41  ;;  %v305_v48 = vld [vmem:[#allocation8 + $0x180] sm:$0xff]  ;;  %v371_v50 = vld [vmem:[#allocation8 + $0x390] sm:$0xff] }
  0x62   :  { %v369_v49 = vld [vmem:[#allocation8 + $0x380] sm:$0xff]  ;;  %v708_v51 = vpack.c.bf16 %v308_v44, %v306_v43  ;;  %v307_v52 = vld [vmem:[#allocation8 + $0x190] sm:$0xff]  ;;  %v374_v53 = vld [vmem:[#allocation8 + $0x3a8] sm:$0xff] }
  0x63   :  { %755 = vmatpush1.bf16.msra.mxu0 %v754_v61  ;;  %v376_v54 = vld [vmem:[#allocation8 + $0x3b8] sm:$0xff]  ;;  %v310_v55 = vld [vmem:[#allocation8 + $0x1a8] sm:$0xff]  ;;  %v774_v57 = vpack.c.bf16 %v371_v50, %v369_v49  ;;  %v710_v58 = vpack.c.bf16 %v307_v52, %v305_v48  ;;  %v309_v60 = vld [vmem:[#allocation8 + $0x1a0] sm:$0xff]  ;;  %v905_v52 = vmov 0  }
  0x64   :  { %691 = vmatpush1.bf16.msra.mxu1 %v690_v62  ;;  %757 = vmatprep.subr.bf16.mxu0 %v756_v63  ;;  %v312_v56 = vld [vmem:[#allocation8 + $0x1b8] sm:$0xff]  ;;  %v776_v59 = vpack.c.bf16 %v376_v54, %v374_v53  ;;  %v373_v61 = vld [vmem:[#allocation8 + $0x3a0] sm:$0xff]  ;;  %v375_v62 = vld [vmem:[#allocation8 + $0x3b0] sm:$0xff] }
  0x65   :  { %693 = vmatprep.subr.bf16.mxu1 %v692_v3  ;;  %v712_v63 = vpack.c.bf16 %v312_v56, %v310_v55  ;;  %v311_v0 = vld [vmem:[#allocation8 + $0x1b0] sm:$0xff]  ;;  %v378_v1 = vld [vmem:[#allocation8 + $0x3c8] sm:$0xff]  ;;  %v380_v2 = vld [vmem:[#allocation8 + $0x3d8] sm:$0xff]  ;;  %v778_v5 = vpack.c.bf16 %v375_v62, %v373_v61  ;;  %802 = vset.pattern.permute.xlu0 %v905_v52 }
  0x66   :  { %v314_v3 = vld [vmem:[#allocation8 + $0x1c8] sm:$0xff]  ;;  %v316_v4 = vld [vmem:[#allocation8 + $0x1d8] sm:$0xff]  ;;  %v714_v6 = vpack.c.bf16 %v311_v0, %v309_v60  ;;  %v780_v7 = vpack.c.bf16 %v380_v2, %v378_v1  ;;  %v379_v13 = vld [vmem:[#allocation8 + $0x3d0] sm:$0xff] }
  0x67   :  { %759 = vmatpush1.bf16.msra.mxu0 %v758_v9  ;;  %v716_v8 = vpack.c.bf16 %v316_v4, %v314_v3  ;;  %v313_v9 = vld [vmem:[#allocation8 + $0x1c0] sm:$0xff]  ;;  %v320_v16 = vld [vmem:[#allocation8 + $0x1f8] sm:$0xff]  ;;  %v382_v17 = vld [vmem:[#allocation8 + $0x3e8] sm:$0xff] }
  0x68   :  { %695 = vmatpush1.bf16.msra.mxu1 %v694_v10  ;;  %761 = vmatprep.subr.bf16.mxu0 %v760_v11  ;;  %v315_v10 = vld [vmem:[#allocation8 + $0x1d0] sm:$0xff]  ;;  %v377_v11 = vld [vmem:[#allocation8 + $0x3c0] sm:$0xff]  ;;  %v384_v19 = vld [vmem:[#allocation8 + $0x3f8] sm:$0xff] }
  0x69   :  { %697 = vmatprep.subr.bf16.mxu1 %v696_v15  ;;  %v718_v12 = vpack.c.bf16 %v315_v10, %v313_v9  ;;  %v782_v14 = vpack.c.bf16 %v379_v13, %v377_v11  ;;  %v318_v15 = vld [vmem:[#allocation8 + $0x1e8] sm:$0xff]  ;;  %v317_v20 = vld [vmem:[#allocation8 + $0x1e0] sm:$0xff]  ;;  %v383_v25 = vld [vmem:[#allocation8 + $0x3f0] sm:$0xff] }
  0x6a   :  { %v720_v18 = vpack.c.bf16 %v320_v16, %v318_v15  ;;  %v381_v24 = vld [vmem:[#allocation8 + $0x3e0] sm:$0xff]  ;;  %v85_v30 = vld [vmem:[%s1014_s2] sm:$0xf] }
  0x6b   :  { %763 = vmatpush1.bf16.msra.mxu0 %v762_v21  ;;  %v319_v21 = vld [vmem:[#allocation8 + $0x1f0] sm:$0xff]  ;;  %v786_v26 = vpack.c.bf16 %v383_v25, %v381_v24  ;;  %v542_v50 = vld [vmem:[%s1017_s5 + $0x8] sm:$0xff] }
  0x6c   :  { %699 = vmatpush1.bf16.msra.mxu1 %v698_v22  ;;  %765 = vmatprep.subr.bf16.mxu0 %v764_v23  ;;  %v784_v22 = vpack.c.bf16 %v384_v19, %v382_v17  ;;  %v722_v23 = vpack.c.bf16 %v319_v21, %v317_v20  ;;  %v385_v53 = vld [vmem:[%s1016_s4] sm:$0x3]  ;;  %s906_s4 = smov [#allocation9]  }
  0x6d   :  { %701 = vmatprep.subr.bf16.mxu1 %v700_v27  ;;  %v87_v27 = vlaneseq  ;;  %v541_v2 = vld [vmem:[%s1017_s5] sm:$0xff]  ;;  %s632_s22 = sshll.u32 %s906_s4, 4  ;;  %s633_s22 = int_to_ptr.vmem [resolvable:$true] %s632_s22 }
  0x6e   :  { %s869_s23 = scalar_lea.vmem %s633_s22, 16  ;;  %s873_s24 = scalar_lea.vmem %s633_s22, 32 }
  0x6f   :  { %767 = vmatpush1.bf16.msra.mxu0 %v766_v33  ;;  %v88_v28 = vshrl.u32 %v87_v27, 7  ;;  %p870_p10 = scmp.ne.s32.totalorder %s633_s22, %s869_s23  ;;  %p874_p11 = scmp.lt.s32.totalorder %s633_s22, %s633_s22 }
  0x70   :  { %703 = vmatpush1.bf16.msra.mxu1 %v702_v34  ;;  %769 = vmatprep.subr.bf16.mxu0 %v768_v35  ;;  %p875_p12 = scmp.lt.s32.totalorder %s873_s24, %s869_s23 }
  0x71   :  { %705 = vmatprep.subr.bf16.mxu1 %v704_v39  ;;  %v89_v29 = vsub.s32 0, %v88_v28  ;;  %v97_v31 = vsub.s32 2, %v88_v28  ;;  %v93_v32 = vsub.s32 1, %v88_v28  ;;  %v101_v33 = vsub.s32 3, %v88_v28 }
  0x72   :  { %p876_p13 = por %p875_p12, %p874_p11 }
  0x73   :  { %771 = vmatpush1.bf16.msra.mxu0 %v770_v45  ;;  %v90_v34 = vrot.slane %v85_v30, %v89_v29  ;;  %v98_v35 = vrot.slane %v85_v30, %v97_v31  ;;  %v94_v36 = vrot.slane %v85_v30, %v93_v32  ;;  %v102_v37 = vrot.slane %v85_v30, %v101_v33 }
  0x74   :  { %707 = vmatpush1.bf16.msra.mxu1 %v706_v46  ;;  %773 = vmatprep.subr.bf16.mxu0 %v772_v47  ;;  %v390_v54 = vrot.slane %v385_v53, %v89_v29  ;;  %v394_v55 = vrot.slane %v385_v53, %v93_v32  ;;  %p877_p0 = pnand %p876_p13, %p870_p10 }
  0x75   :  { %709 = vmatprep.subr.bf16.mxu1 %v708_v51  ;;  %v613_v51 = vld [vmem:[#allocation2] sm:$0x1] }
  0x76   :  { %616 = vperm.xlu0 %802, %v613_v51  }
  0x77   :  { %775 = vmatpush1.bf16.msra.mxu0 %v774_v57 }
  0x78   :  { %711 = vmatpush1.bf16.msra.mxu1 %v710_v58  ;;  %777 = vmatprep.subr.bf16.mxu0 %v776_v59 }
  0x79   :  { %713 = vmatprep.subr.bf16.mxu1 %v712_v63 }
  0x7b   :  { %779 = vmatpush1.bf16.msra.mxu0 %v778_v5 }
  0x7c   :  { %715 = vmatpush1.bf16.msra.mxu1 %v714_v6  ;;  %781 = vmatprep.subr.bf16.mxu0 %v780_v7 }
  0x7d   :  { %717 = vmatprep.subr.bf16.mxu1 %v716_v8 }
  0x7f   :  { %783 = vmatpush1.bf16.msra.mxu0 %v782_v14 }
  0x80   :  { %719 = vmatpush1.bf16.msra.mxu1 %v718_v12  ;;  %785 = vmatprep.subr.bf16.mxu0 %v784_v22 }
  0x81   :  { %721 = vmatprep.subr.bf16.mxu1 %v720_v18 }
  0x83   :  { %787 = vmatpush1.bf16.msra.mxu0 %v786_v26 }
  0x84   :  { %723 = vmatpush1.bf16.msra.mxu1 %v722_v23 }
  0xf5   :  { %v617_v3 = vpop.permute.xlu0 %616 }
  0xf6   :  { %v622_v4 = vrot.slane %v617_v3, %v89_v29 }
 0x119   :  { %v177_v38 = vpop.f32.mrb[0].mxu0 }
 0x11a   :  { %v178_v39 = vadd.f32 %v177_v38, %v90_v34  ;;  %v248_v40 = vpop.f32.mrb[0].mxu1  ;;  %v179_v41 = vpop.f32.mrb[1].mxu0 }
 0x11b   :  { %v249_v42 = vadd.f32 %v248_v40, %v98_v35  ;;  %v180_v43 = vadd.f32 %v179_v41, %v94_v36  ;;  %v250_v44 = vpop.f32.mrb[1].mxu1 }
 0x11c   :  { %v251_v45 = vadd.f32 %v250_v44, %v102_v37  ;;  %v253_v48 = vmax.f32 %v178_v39, 0.0 }
 0x11d   :  { %v255_v46 = vmax.f32 %v249_v42, 0.0  ;;  %v254_v47 = vmax.f32 %v180_v43, 0.0 }
 0x11e   :  { %v256_v49 = vmax.f32 %v251_v45, 0.0 }
 0x11f   :  { %461 = vmatprep.mubr.f32.mxu1 %v254_v47 }
 0x120   :  { %532 = vmatprep.mubr.f32.mxu0 %v256_v49  ;;  %462 = vmatmul.mubr.f32.vlgmr.msra.gmra.mrb[2].mxu1 %v253_v48 }
 0x121   :  { %533 = vmatmul.mubr.f32.vlgmr.msra.gmra.mrb[2].mxu0 %v255_v46  ;;  %607 = vmatprep.mubr.f32.mxu1 %v542_v50 }
 0x1f3   :  { %v463_v56 = vpop.f32.mrb[2].mxu1 }
 0x1f4   :  { %v464_v57 = vadd.f32 %v463_v56, %v390_v54  ;;  %v534_v58 = vpop.f32.mrb[2].mxu0  ;;  %v465_v59 = vpop.f32.mrb[3].mxu1 }
 0x1f5   :  { %v466_v60 = vadd.f32 %v465_v59, %v394_v55  ;;  %v536_v61 = vpop.f32.mrb[3].mxu0 }
 0x1f6   :  { %v535_v62 = vadd.f32 %v534_v58, %v464_v57 }
 0x1f7   :  { %v537_v63 = vadd.f32 %v536_v61, %v466_v60 }
 0x1f8   :  { %v539_v1 = vmax.f32 %v535_v62, 0.0 }
 0x1f9   :  { %v540_v0 = vmax.f32 %v537_v63, 0.0 }
 0x1fb   :  { %543 = vmatprep.subr.mxu1 %v540_v0 }
 0x1fc   :  { %544 = vmatpush1.xpose.msra.mxu1 %v539_v1 }
 0x1ff   :  { %608 = vmatmul.mubr.f32.vlgmr.msra.gmra.mrb[4].mxu1 %v541_v2 }
 0x2d2   :  { %v609_v5 = vpop.f32.mrb[4].mxu1 }
 0x2d3   :  { %v623_v6 = vadd.f32 %v622_v4, %v609_v5  ;;  %v611_v7 = vpop.f32.mrb[5].mxu1 }
 0x2d5   :  { %625 = vst.msk [vmem:[#allocation9] sm:$0x1] %vm624_vm1, %v623_v6 }
 0x2d6   :  { %880 = shalt.err (!%p877_p0)
}
 0x2d7   :  { %s881_s26 = scalar_lea.hbm %s1019_s7, 16 }
 0x2d8   :  { %p882_p1 = scmp.ne.s32.totalorder %s1019_s7, %s881_s26  ;;  %p885_p2 = scmp.lt.u32.totalorder %s881_s26, %s1019_s7 }
 0x2da   :  { %p887_p3 = pnand %p885_p2, %p882_p1 }
 0x2dc   :  { %890 = shalt.err (!%p887_p3)
}
 0x2dd   :  { %635 = dma.vmem_to_hbm [thread:$0]  %s633_s22, 16, %s1019_s7, [#allocation5]  }
 0x2de   :  { %895 = dma.done.wait [#allocation5], 16  }
 0x2df   :  { %896 = vsyncadd [#allocation5], 4294967280 }
 0x2e0   :  { %639 = vsyncpa [#allocation4], 1 }
 0x2e1   :  { %640 = vsyncpa [#allocation7], 1 }
 0x2e2   :  { %641 = vsyncpa [#allocation5], 1 }

</bundles_post_ra>
